<compile_context>
chip_gen: v6e
topology: v6e:2x2x1
jax: 0.10.0
libtpu: 0.0.40
codegen_flags: <defaults>
</compile_context>

<pallas_src>
import jax
import jax.numpy as jnp
from jax.experimental import pallas as pl
from jax.experimental.pallas import tpu as pltpu

INPUT_SIZE = 601
H1, H2, H3 = 512, 256, 128
OUTPUT_SIZE = 3
BN_EPS = 1e-5

IN_PAD = 640    # 601 rounded up to a multiple of 128
OUT_PAD = 128   # lane-dense final output; real logits live in columns [:3]


def _round_up(n, m):
    return ((n + m - 1) // m) * m


# ---------------------------------------------------------------------------
# Kernel
# ---------------------------------------------------------------------------
def fcnn_kernel(x_ref,
                w1_ref, b1_ref,
                w2_ref, b2_ref,
                w3_ref, b3_ref,
                w4_ref, b4_ref,
                o_ref):
    # BatchNorm affines are pre-folded into (wN, bN); dropout is identity (eval).
    x = x_ref[...]                                            # (TILE_B, 640) bf16

    h = jnp.dot(x, w1_ref[...], preferred_element_type=jnp.float32) + b1_ref[...]
    h = jnp.maximum(h, 0.0)

    h = jnp.dot(h.astype(w2_ref.dtype), w2_ref[...],
                preferred_element_type=jnp.float32) + b2_ref[...]
    h = jnp.maximum(h, 0.0)

    h = jnp.dot(h.astype(w3_ref.dtype), w3_ref[...],
                preferred_element_type=jnp.float32) + b3_ref[...]
    h = jnp.maximum(h, 0.0)

    o_ref[...] = jnp.dot(h.astype(w4_ref.dtype), w4_ref[...],
                         preferred_element_type=jnp.float32) + b4_ref[...]


# ---------------------------------------------------------------------------
# Wrapper
# ---------------------------------------------------------------------------
def _const_spec(shape):
    # Whole-array block, constant index -> stays resident in VMEM across grid steps.
    ndim = len(shape)
    return pl.BlockSpec(shape, lambda i, _n=ndim: (0,) * _n)


def fcnn_forward(x, kparams, *, tile_b=512):
    """x: (B, 601) f32. kparams: output of prepare_params()."""
    B = x.shape[0]
    tb = min(tile_b, _round_up(B, 8))          # batch tile: multiple of 8 sublanes
    b_pad = _round_up(B, tb)

    xp = jnp.zeros((b_pad, IN_PAD), jnp.bfloat16)
    xp = xp.at[:B, :INPUT_SIZE].set(x.astype(jnp.bfloat16))

    inputs = (xp,
              kparams["w1"], kparams["b1"],
              kparams["w2"], kparams["b2"],
              kparams["w3"], kparams["b3"],
              kparams["w4"], kparams["b4"])

    out = pl.pallas_call(
        fcnn_kernel,
        out_shape=jax.ShapeDtypeStruct((b_pad, OUT_PAD), jnp.float32),
        grid_spec=pltpu.PrefetchScalarGridSpec(
            num_scalar_prefetch=0,
            grid=(b_pad // tb,),
            in_specs=[pl.BlockSpec((tb, IN_PAD), lambda i: (i, 0))]
                     + [_const_spec(a.shape) for a in inputs[1:]],
            out_specs=pl.BlockSpec((tb, OUT_PAD), lambda i: (i, 0)),
        ),
        compiler_params=pltpu.CompilerParams(
            dimension_semantics=("parallel",)),   # shards batch tiles across TCs on v7x
    )(*inputs)
    return out[:B, :OUTPUT_SIZE]


# ---------------------------------------------------------------------------
# Parameters
# ---------------------------------------------------------------------------
def init_params(key):
    """Raw PyTorch-style parameters (f32): Linear w/b + BatchNorm gamma/beta/mean/var."""
    keys = list(jax.random.split(key, 20))
    it = iter(keys)

    def linear(fan_in, fan_out):
        bound = 1.0 / jnp.sqrt(jnp.float32(fan_in))
        w = jax.random.uniform(next(it), (fan_in, fan_out), jnp.float32, -bound, bound)
        b = jax.random.uniform(next(it), (fan_out,), jnp.float32, -bound, bound)
        return w, b

    def bn(n):
        g = jax.random.uniform(next(it), (n,), jnp.float32, 0.5, 1.5)
        beta = jax.random.uniform(next(it), (n,), jnp.float32, -0.5, 0.5)
        m = jax.random.uniform(next(it), (n,), jnp.float32, -0.5, 0.5)
        v = jax.random.uniform(next(it), (n,), jnp.float32, 0.5, 1.5)
        return g, beta, m, v

    w1, b1 = linear(INPUT_SIZE, H1); g1, be1, m1, v1 = bn(H1)
    w2, b2 = linear(H1, H2);         g2, be2, m2, v2 = bn(H2)
    w3, b3 = linear(H2, H3);         g3, be3, m3, v3 = bn(H3)
    w4, b4 = linear(H3, OUTPUT_SIZE)

    return dict(w1=w1, b1=b1, g1=g1, beta1=be1, m1=m1, v1=v1,
                w2=w2, b2=b2, g2=g2, beta2=be2, m2=m2, v2=v2,
                w3=w3, b3=b3, g3=g3, beta3=be3, m3=m3, v3=v3,
                w4=w4, b4=b4)


def prepare_params(p):
    """Fold eval-mode BatchNorm into the following Linear; pad + cast for the kernel."""
    def bn_affine(g, beta, m, v):
        s = g / jnp.sqrt(v + BN_EPS)
        return s, beta - m * s

    s1, t1 = bn_affine(p["g1"], p["beta1"], p["m1"], p["v1"])
    s2, t2 = bn_affine(p["g2"], p["beta2"], p["m2"], p["v2"])
    s3, t3 = bn_affine(p["g3"], p["beta3"], p["m3"], p["v3"])

    # layer 1: pad K 601 -> 640 with zero rows.
    w1 = jnp.zeros((IN_PAD, H1), jnp.float32).at[:INPUT_SIZE].set(p["w1"])
    b1 = p["b1"]

    # layers 2..4: bn(relu(h)) @ W = relu(h) @ (diag(s) W) + (t @ W)  -> fold exactly.
    w2 = s1[:, None] * p["w2"]; b2 = p["b2"] + t1 @ p["w2"]
    w3 = s2[:, None] * p["w3"]; b3 = p["b3"] + t2 @ p["w3"]
    w4 = s3[:, None] * p["w4"]; b4 = p["b4"] + t3 @ p["w4"]

    # final layer: pad N 3 -> 128 zero columns (lane-dense output store).
    w4p = jnp.zeros((H3, OUT_PAD), jnp.float32).at[:, :OUTPUT_SIZE].set(w4)
    b4p = jnp.zeros((OUT_PAD,), jnp.float32).at[:OUTPUT_SIZE].set(b4)

    def row(b):  # biases as (1, N) f32 rows, broadcast over the batch tile
        return b.reshape(1, -1).astype(jnp.float32)

    return dict(
        w1=w1.astype(jnp.bfloat16), b1=row(b1),
        w2=w2.astype(jnp.bfloat16), b2=row(b2),
        w3=w3.astype(jnp.bfloat16), b3=row(b3),
        w4=w4p.astype(jnp.bfloat16), b4=row(b4p),
    )


# ---------------------------------------------------------------------------
# References
# ---------------------------------------------------------------------------
def reference_forward(x, p):
    """Pure-JAX f32 eval-mode forward with explicit BatchNorm (matches PyTorch)."""
    def bn(h, g, beta, m, v):
        return (h - m) / jnp.sqrt(v + BN_EPS) * g + beta
    h = jnp.maximum(x @ p["w1"] + p["b1"], 0.0)
    h = bn(h, p["g1"], p["beta1"], p["m1"], p["v1"])
    h = jnp.maximum(h @ p["w2"] + p["b2"], 0.0)
    h = bn(h, p["g2"], p["beta2"], p["m2"], p["v2"])
    h = jnp.maximum(h @ p["w3"] + p["b3"], 0.0)
    h = bn(h, p["g3"], p["beta3"], p["m3"], p["v3"])
    return h @ p["w4"] + p["b4"]


def folded_reference(x, kp):
    """Pure-JAX forward using the SAME folded bf16 params the kernel consumes."""
    xp = jnp.zeros((x.shape[0], IN_PAD), jnp.bfloat16)
    xp = xp.at[:, :INPUT_SIZE].set(x.astype(jnp.bfloat16))
    h = jnp.dot(xp, kp["w1"], preferred_element_type=jnp.float32) + kp["b1"]
    h = jnp.maximum(h, 0.0)
    h = jnp.dot(h.astype(jnp.bfloat16), kp["w2"], preferred_element_type=jnp.float32) + kp["b2"]
    h = jnp.maximum(h, 0.0)
    h = jnp.dot(h.astype(jnp.bfloat16), kp["w3"], preferred_element_type=jnp.float32) + kp["b3"]
    h = jnp.maximum(h, 0.0)
    o = jnp.dot(h.astype(jnp.bfloat16), kp["w4"], preferred_element_type=jnp.float32) + kp["b4"]
    return o[:, :OUTPUT_SIZE]


if __name__ == "__main__":
    key = jax.random.PRNGKey(0)
    kx, kp = jax.random.split(key)

    B = 8
    x = jax.random.normal(kx, (B, INPUT_SIZE), jnp.float32)
    raw = init_params(kp)
    kparams = prepare_params(raw)

    out = fcnn_forward(x, kparams)
    out = jax.block_until_ready(out)
    assert out.shape == (B, OUTPUT_SIZE)

    # Exact-math check against a JAX forward using the same folded bf16 params
    # (only MXU vs XLA accumulation order differs).
    ref_folded = folded_reference(x, kparams)
    assert jnp.allclose(out, ref_folded, atol=2e-3, rtol=2e-3), \
        "kernel mismatch vs folded bf16 JAX reference"

    # Semantics check against the full f32 eval-mode module. bf16 weight/activation
    # quantization compounds over 4 layers, so the tolerance is loose here.
    ref_f32 = reference_forward(x, raw)
    assert jnp.allclose(out, ref_f32, atol=1.5e-1, rtol=5e-2), \
        "kernel mismatch vs f32 BatchNorm reference"

    print("KERNEL_OK")
</pallas_src>

<mosaic_0001>
module attributes {stable_mosaic.version = 11 : i64} {
  func.func @fcnn_kernel(%arg0: i32, %arg1: memref<8x640xbf16, #tpu.memory_space<vmem>>, %arg2: memref<640x512xbf16, #tpu.memory_space<vmem>>, %arg3: memref<1x512xf32, #tpu.memory_space<vmem>>, %arg4: memref<512x256xbf16, #tpu.memory_space<vmem>>, %arg5: memref<1x256xf32, #tpu.memory_space<vmem>>, %arg6: memref<256x128xbf16, #tpu.memory_space<vmem>>, %arg7: memref<1x128xf32, #tpu.memory_space<vmem>>, %arg8: memref<128x128xbf16, #tpu.memory_space<vmem>>, %arg9: memref<1x128xf32, #tpu.memory_space<vmem>>, %arg10: memref<8x128xf32, #tpu.memory_space<vmem>>) attributes {dimension_semantics = [#tpu.dimension_semantics<parallel>], iteration_bounds = array<i64: 1>, scalar_prefetch = 0 : i64, scratch_operands = 0 : i64, tpu.core_type = #tpu.core_type<tc>, window_params = [{transform_indices = @transform_0, window_bounds = array<i64: 8, 640>}, {pipeline_mode = #tpu.pipeline_mode<synchronous>, transform_indices = @transform_1, window_bounds = array<i64: 640, 512>}, {pipeline_mode = #tpu.pipeline_mode<synchronous>, transform_indices = @transform_2, window_bounds = array<i64: 1, 512>}, {pipeline_mode = #tpu.pipeline_mode<synchronous>, transform_indices = @transform_3, window_bounds = array<i64: 512, 256>}, {pipeline_mode = #tpu.pipeline_mode<synchronous>, transform_indices = @transform_4, window_bounds = array<i64: 1, 256>}, {pipeline_mode = #tpu.pipeline_mode<synchronous>, transform_indices = @transform_5, window_bounds = array<i64: 256, 128>}, {pipeline_mode = #tpu.pipeline_mode<synchronous>, transform_indices = @transform_6, window_bounds = array<i64: 1, 128>}, {pipeline_mode = #tpu.pipeline_mode<synchronous>, transform_indices = @transform_7, window_bounds = array<i64: 128, 128>}, {pipeline_mode = #tpu.pipeline_mode<synchronous>, transform_indices = @transform_8, window_bounds = array<i64: 1, 128>}, {transform_indices = @transform_9, window_bounds = array<i64: 8, 128>}]} {
    %c0 = arith.constant 0 : index
    %c0_0 = arith.constant 0 : index
    %0 = vector.load %arg1[%c0, %c0_0] : memref<8x640xbf16, #tpu.memory_space<vmem>>, vector<8x640xbf16>
    %c0_1 = arith.constant 0 : index
    %c0_2 = arith.constant 0 : index
    %1 = vector.load %arg2[%c0_1, %c0_2] : memref<640x512xbf16, #tpu.memory_space<vmem>>, vector<640x512xbf16>
    %cst = arith.constant dense<0.000000e+00> : vector<8x512xf32>
    %2 = tpu.matmul %0, %1, %cst {dimension_numbers = #tpu.dot_dimension_numbers<[1], [0], [0], [1], [0, 0, 1, 1], [], []>} : vector<8x640xbf16>, vector<640x512xbf16>, vector<8x512xf32> -> vector<8x512xf32>
    %c0_3 = arith.constant 0 : index
    %c0_4 = arith.constant 0 : index
    %3 = vector.load %arg3[%c0_3, %c0_4] : memref<1x512xf32, #tpu.memory_space<vmem>>, vector<1x512xf32>
    %4 = vector.broadcast %3 : vector<1x512xf32> to vector<8x512xf32>
    %5 = arith.addf %2, %4 : vector<8x512xf32>
    %cst_5 = arith.constant 0.000000e+00 : f32
    %6 = vector.broadcast %cst_5 : f32 to vector<8x512xf32>
    %7 = arith.maximumf %5, %6 : vector<8x512xf32>
    %8 = arith.truncf %7 : vector<8x512xf32> to vector<8x512xbf16>
    %c0_6 = arith.constant 0 : index
    %c0_7 = arith.constant 0 : index
    %9 = vector.load %arg4[%c0_6, %c0_7] : memref<512x256xbf16, #tpu.memory_space<vmem>>, vector<512x256xbf16>
    %cst_8 = arith.constant dense<0.000000e+00> : vector<8x256xf32>
    %10 = tpu.matmul %8, %9, %cst_8 {dimension_numbers = #tpu.dot_dimension_numbers<[1], [0], [0], [1], [0, 0, 1, 1], [], []>} : vector<8x512xbf16>, vector<512x256xbf16>, vector<8x256xf32> -> vector<8x256xf32>
    %c0_9 = arith.constant 0 : index
    %c0_10 = arith.constant 0 : index
    %11 = vector.load %arg5[%c0_9, %c0_10] : memref<1x256xf32, #tpu.memory_space<vmem>>, vector<1x256xf32>
    %12 = vector.broadcast %11 : vector<1x256xf32> to vector<8x256xf32>
    %13 = arith.addf %10, %12 : vector<8x256xf32>
    %cst_11 = arith.constant 0.000000e+00 : f32
    %14 = vector.broadcast %cst_11 : f32 to vector<8x256xf32>
    %15 = arith.maximumf %13, %14 : vector<8x256xf32>
    %16 = arith.truncf %15 : vector<8x256xf32> to vector<8x256xbf16>
    %c0_12 = arith.constant 0 : index
    %c0_13 = arith.constant 0 : index
    %17 = vector.load %arg6[%c0_12, %c0_13] : memref<256x128xbf16, #tpu.memory_space<vmem>>, vector<256x128xbf16>
    %cst_14 = arith.constant dense<0.000000e+00> : vector<8x128xf32>
    %18 = tpu.matmul %16, %17, %cst_14 {dimension_numbers = #tpu.dot_dimension_numbers<[1], [0], [0], [1], [0, 0, 1, 1], [], []>} : vector<8x256xbf16>, vector<256x128xbf16>, vector<8x128xf32> -> vector<8x128xf32>
    %c0_15 = arith.constant 0 : index
    %c0_16 = arith.constant 0 : index
    %19 = vector.load %arg7[%c0_15, %c0_16] : memref<1x128xf32, #tpu.memory_space<vmem>>, vector<1x128xf32>
    %20 = vector.broadcast %19 : vector<1x128xf32> to vector<8x128xf32>
    %21 = arith.addf %18, %20 : vector<8x128xf32>
    %cst_17 = arith.constant 0.000000e+00 : f32
    %22 = vector.broadcast %cst_17 : f32 to vector<8x128xf32>
    %23 = arith.maximumf %21, %22 : vector<8x128xf32>
    %24 = arith.truncf %23 : vector<8x128xf32> to vector<8x128xbf16>
    %c0_18 = arith.constant 0 : index
    %c0_19 = arith.constant 0 : index
    %25 = vector.load %arg8[%c0_18, %c0_19] : memref<128x128xbf16, #tpu.memory_space<vmem>>, vector<128x128xbf16>
    %cst_20 = arith.constant dense<0.000000e+00> : vector<8x128xf32>
    %26 = tpu.matmul %24, %25, %cst_20 {dimension_numbers = #tpu.dot_dimension_numbers<[1], [0], [0], [1], [0, 0, 1, 1], [], []>} : vector<8x128xbf16>, vector<128x128xbf16>, vector<8x128xf32> -> vector<8x128xf32>
    %c0_21 = arith.constant 0 : index
    %c0_22 = arith.constant 0 : index
    %27 = vector.load %arg9[%c0_21, %c0_22] : memref<1x128xf32, #tpu.memory_space<vmem>>, vector<1x128xf32>
    %28 = vector.broadcast %27 : vector<1x128xf32> to vector<8x128xf32>
    %29 = arith.addf %26, %28 : vector<8x128xf32>
    %c0_23 = arith.constant 0 : index
    %c0_24 = arith.constant 0 : index
    %30 = vector.load %arg10[%c0_23, %c0_24] : memref<8x128xf32, #tpu.memory_space<vmem>>, vector<8x128xf32>
    tpu.vector_store %arg10[%c0_23, %c0_24], %29 {strides = array<i32>} : memref<8x128xf32, #tpu.memory_space<vmem>>, vector<8x128xf32>,
    return
  }
  func.func @transform_0(%arg0: i32) -> (i32, i32) {
    %c0_i32 = arith.constant 0 : i32
    %c0_i32_0 = arith.constant 0 : i32
    return %arg0, %c0_i32 : i32, i32
  }
  func.func @transform_1(%arg0: i32) -> (i32, i32) {
    %c0_i32 = arith.constant 0 : i32
    %c0_i32_0 = arith.constant 0 : i32
    %c0_i32_1 = arith.constant 0 : i32
    return %c0_i32, %c0_i32_0 : i32, i32
  }
  func.func @transform_2(%arg0: i32) -> (i32, i32) {
    %c0_i32 = arith.constant 0 : i32
    %c0_i32_0 = arith.constant 0 : i32
    %c0_i32_1 = arith.constant 0 : i32
    return %c0_i32, %c0_i32_0 : i32, i32
  }
  func.func @transform_3(%arg0: i32) -> (i32, i32) {
    %c0_i32 = arith.constant 0 : i32
    %c0_i32_0 = arith.constant 0 : i32
    %c0_i32_1 = arith.constant 0 : i32
    return %c0_i32, %c0_i32_0 : i32, i32
  }
  func.func @transform_4(%arg0: i32) -> (i32, i32) {
    %c0_i32 = arith.constant 0 : i32
    %c0_i32_0 = arith.constant 0 : i32
    %c0_i32_1 = arith.constant 0 : i32
    return %c0_i32, %c0_i32_0 : i32, i32
  }
  func.func @transform_5(%arg0: i32) -> (i32, i32) {
    %c0_i32 = arith.constant 0 : i32
    %c0_i32_0 = arith.constant 0 : i32
    %c0_i32_1 = arith.constant 0 : i32
    return %c0_i32, %c0_i32_0 : i32, i32
  }
  func.func @transform_6(%arg0: i32) -> (i32, i32) {
    %c0_i32 = arith.constant 0 : i32
    %c0_i32_0 = arith.constant 0 : i32
    %c0_i32_1 = arith.constant 0 : i32
    return %c0_i32, %c0_i32_0 : i32, i32
  }
  func.func @transform_7(%arg0: i32) -> (i32, i32) {
    %c0_i32 = arith.constant 0 : i32
    %c0_i32_0 = arith.constant 0 : i32
    %c0_i32_1 = arith.constant 0 : i32
    return %c0_i32, %c0_i32_0 : i32, i32
  }
  func.func @transform_8(%arg0: i32) -> (i32, i32) {
    %c0_i32 = arith.constant 0 : i32
    %c0_i32_0 = arith.constant 0 : i32
    %c0_i32_1 = arith.constant 0 : i32
    return %c0_i32, %c0_i32_0 : i32, i32
  }
  func.func @transform_9(%arg0: i32) -> (i32, i32) {
    %c0_i32 = arith.constant 0 : i32
    %c0_i32_0 = arith.constant 0 : i32
    return %arg0, %c0_i32 : i32, i32
  }
}

</mosaic_0001>

<bundles_post_ra>
// kernel: tpu_custom_call.1
= control target key start
LH: loop header
LB: loop body
LE: loop exit
PB: predicated region body
PF: predicated region fallthrough
CT: control target
= control target key end

     0   :  { %14 = vsyncpa [#allocation3], 0  ;;  %s3127_s0 = inlined_call_operand.hbm [shape: bf16[8,640], index: 0, kind: input, shape index: {}]   ;;  %s3128_s1 = inlined_call_operand.hbm [shape: bf16[640,512], index: 1, kind: input, shape index: {}]   ;;  %s3129_s2 = inlined_call_operand.hbm [shape: f32[1,512], index: 2, kind: input, shape index: {}]   ;;  %s3130_s3 = inlined_call_operand.hbm [shape: bf16[512,256], index: 3, kind: input, shape index: {}]   ;;  %s3131_s4 = inlined_call_operand.vmem [shape: f32[1,256], index: 4, kind: input, shape index: {}]   ;;  %s3132_s5 = inlined_call_operand.hbm [shape: bf16[256,128], index: 5, kind: input, shape index: {}]   ;;  %s3133_s6 = inlined_call_operand.vmem [shape: f32[1,128], index: 6, kind: input, shape index: {}]   ;;  %s3134_s7 = inlined_call_operand.hbm [shape: bf16[128,128], index: 7, kind: input, shape index: {}]   ;;  %s3135_s8 = inlined_call_operand.vmem [shape: f32[1,128], index: 8, kind: input, shape index: {}]   ;;  %s3136_s9 = inlined_call_operand.hbm [shape: f32[8,128], index: 9, kind: output, shape index: {}]  }
   0x1   :  { %15 = vsyncpa [#allocation6], 0 }
   0x2   :  { %16 = vsyncpa [#allocation9], 0 }
   0x3   :  { %17 = vsyncpa [#allocation12], 0 }
   0x4   :  { %18 = vsyncpa [#allocation4], 0  ;;  %s2995_s30 = smov [#allocation5]  }
   0x5   :  { %s34_s10 = sshll.u32 %s2995_s30, 4  ;;  %s35_s10 = int_to_ptr.vmem [resolvable:$true] %s34_s10 }
   0x6   :  { %s2853_s11 = scalar_lea.vmem %s35_s10, 20480  ;;  %p2858_p1 = scmp.lt.s32.totalorder %s35_s10, %s35_s10 }
   0x7   :  { %p2854_p0 = scmp.ne.s32.totalorder %s35_s10, %s2853_s11  ;;  %p2859_p2 = scmp.lt.s32.totalorder %s2853_s11, %s2853_s11 }
   0x9   :  { %p2860_p3 = por %p2859_p2, %p2858_p1 }
   0xb   :  { %p2861_p4 = pnand %p2860_p3, %p2854_p0 }
   0xd   :  { %2864 = shalt.err (!%p2861_p4)
}
   0xe   :  { %s2996_s12 = smov 256   ;;  %s2997_s13 = smov 16  }
   0xf   :  { %40 = dma.hbm_to_vmem [thread:$0]  %s3128_s1, 20480, %s35_s10, [#allocation6], %s2996_s12, %s2996_s12, %s2997_s13  }
  0x10   :  { %s2998_s16 = smov [#allocation8]  }
  0x11   :  { %s56_s17 = sshll.u32 %s2998_s16, 4  ;;  %s57_s17 = int_to_ptr.vmem [resolvable:$true] %s56_s17 }
  0x12   :  { %s2873_s18 = scalar_lea.vmem %s57_s17, 8192  ;;  %p2878_p6 = scmp.lt.s32.totalorder %s57_s17, %s57_s17 }
  0x13   :  { %p2874_p5 = scmp.ne.s32.totalorder %s57_s17, %s2873_s18  ;;  %p2879_p7 = scmp.lt.s32.totalorder %s2873_s18, %s2873_s18 }
  0x15   :  { %p2880_p8 = por %p2879_p7, %p2878_p6 }
  0x17   :  { %p2881_p9 = pnand %p2880_p8, %p2874_p5 }
  0x19   :  { %2884 = shalt.err (!%p2881_p9)
}
  0x1a   :  { %s2999_s19 = smov 128   ;;  %s3000_s20 = smov 8  }
  0x1b   :  { %62 = dma.hbm_to_vmem [thread:$0]  %s3130_s3, 8192, %s57_s17, [#allocation9], %s2999_s19, %s2999_s19, %s3000_s20  }
  0x1c   :  { %s3001_s23 = smov [#allocation2]   ;;  %s3002_s25 = smov [#allocation7]  }
  0x1d   :  { %s25_s24 = sshll.u32 %s3001_s23, 4  ;;  %s47_s1 = sshll.u32 %s3002_s25, 4  ;;  %s26_s24 = int_to_ptr.vmem [resolvable:$true] %s25_s24  ;;  %s48_s1 = int_to_ptr.vmem [resolvable:$true] %s47_s1 }
  0x1e   :  { %s2893_s26 = scalar_lea.vmem %s26_s24, 320  ;;  %p2898_p11 = scmp.lt.s32.totalorder %s26_s24, %s26_s24 }
  0x1f   :  { %p2894_p10 = scmp.ne.s32.totalorder %s26_s24, %s2893_s26  ;;  %p2899_p12 = scmp.lt.s32.totalorder %s2893_s26, %s2893_s26 }
  0x21   :  { %p2900_p13 = por %p2899_p12, %p2898_p11 }
  0x23   :  { %p2901_p0 = pnand %p2900_p13, %p2894_p10 }
  0x25   :  { %2904 = shalt.err (!%p2901_p0)
}
  0x26   :  { %28 = dma.hbm_to_vmem [thread:$0]  %s3127_s0, 320, %s26_s24, [#allocation3]  }
  0x27   :  { %s2913_s29 = scalar_lea.vmem %s48_s1, 64  ;;  %p2918_p2 = scmp.lt.s32.totalorder %s48_s1, %s48_s1 }
  0x28   :  { %p2914_p1 = scmp.ne.s32.totalorder %s48_s1, %s2913_s29  ;;  %p2919_p3 = scmp.lt.s32.totalorder %s2913_s29, %s2913_s29 }
  0x2a   :  { %p2920_p4 = por %p2919_p3, %p2918_p2 }
  0x2c   :  { %p2921_p5 = pnand %p2920_p4, %p2914_p1 }
  0x2e   :  { %2924 = shalt.err (!%p2921_p5)
}
  0x2f   :  { %50 = dma.hbm_to_vmem [thread:$0]  %s3129_s2, 64, %s48_s1, [#allocation6]  }
  0x30   :  { %s3003_s10 = smov [#allocation10]  }
  0x31   :  { %s70_s11 = sshll.u32 %s3003_s10, 4  ;;  %s71_s11 = int_to_ptr.vmem [resolvable:$true] %s70_s11 }
  0x32   :  { %s2933_s12 = scalar_lea.vmem %s71_s11, 2048  ;;  %p2938_p7 = scmp.lt.s32.totalorder %s71_s11, %s71_s11 }
  0x33   :  { %p2934_p6 = scmp.ne.s32.totalorder %s71_s11, %s2933_s12  ;;  %p2939_p8 = scmp.lt.s32.totalorder %s2933_s12, %s2933_s12 }
  0x35   :  { %p2940_p9 = por %p2939_p8, %p2938_p7 }
  0x37   :  { %p2941_p10 = pnand %p2940_p9, %p2934_p6 }
  0x39   :  { %2944 = shalt.err (!%p2941_p10)
}
  0x3a   :  { %s3004_s0 = smov 64   ;;  %s3005_s13 = smov 4  }
  0x3b   :  { %76 = dma.hbm_to_vmem [thread:$0]  %s3132_s5, 2048, %s71_s11, [#allocation9], %s3004_s0, %s3004_s0, %s3005_s13  }
  0x3c   :  { %s3006_s16 = smov [#allocation11]  }
  0x3d   :  { %s84_s17 = sshll.u32 %s3006_s16, 4  ;;  %s85_s17 = int_to_ptr.vmem [resolvable:$true] %s84_s17 }
  0x3e   :  { %s2953_s2 = scalar_lea.vmem %s85_s17, 1024  ;;  %p2958_p12 = scmp.lt.s32.totalorder %s85_s17, %s85_s17 }
  0x3f   :  { %p2954_p11 = scmp.ne.s32.totalorder %s85_s17, %s2953_s2  ;;  %p2959_p13 = scmp.lt.s32.totalorder %s2953_s2, %s2953_s2 }
  0x41   :  { %p2960_p0 = por %p2959_p13, %p2958_p12 }
  0x43   :  { %p2961_p1 = pnand %p2960_p0, %p2954_p11 }
  0x45   :  { %2964 = shalt.err (!%p2961_p1)
}
  0x46   :  { %90 = dma.hbm_to_vmem [thread:$0]  %s3134_s7, 1024, %s85_s17, [#allocation12], %s3004_s0, %s3004_s0, %s3005_s13  }
  0x47   :  { %2985 = dma.done.wait [#allocation3], 320  }
  0x48   :  { %2986 = vsyncadd [#allocation3], 4294966976 }
  0x49   :  { %2987 = dma.done.wait [#allocation6], 20544  }
  0x4a   :  { %2988 = vsyncadd [#allocation6], 4294946752 }
  0x4b   :  { %2989 = dma.done.wait [#allocation9], 10240  }
  0x4c   :  { %2990 = vsyncadd [#allocation9], 4294957056 }
  0x4d   :  { %2991 = dma.done.wait [#allocation12], 1024  }
  0x4e   :  { %2992 = vsyncadd [#allocation12], 4294966272  ;;  %v2480_v0 = vld [vmem:[#allocation5 + $0xe4] ss:$16 sps:$4 sm:$0xff]   ;;  %v2484_v2 = vld [vmem:[#allocation5 + $0xe0] ss:$16 sps:$4 sm:$0xff]  }
  0x4f   :  { %v2482_v1 = vld [vmem:[#allocation5 + $0x2e4] ss:$16 sps:$4 sm:$0xff]   ;;  %1115 = vmatprep.subr.bf16.mxu0 %v2480_v0  ;;  %v2485_v3 = vld [vmem:[#allocation5 + $0x2e0] ss:$16 sps:$4 sm:$0xff]   ;;  %vm3009_vm0 = vmmov 0   ;;  %s3010_s23 = smov [#allocation13]  }
  0x50   :  { %1156 = vmatprep.subr.bf16.mxu1 %v2482_v1  ;;  %v2486_v4 = vld [vmem:[#allocation5 + $0xc4] ss:$16 sps:$4 sm:$0xff]   ;;  %1116 = vmatpush1.bf16.msra.mxu0 %v2484_v2  ;;  %v2490_v6 = vld [vmem:[#allocation5 + $0xc0] ss:$16 sps:$4 sm:$0xff]   ;;  %s2146_s24 = sshll.u32 %s3010_s23, 4  ;;  %s2147_s24 = int_to_ptr.vmem [resolvable:$true] %s2146_s24 }
  0x51   :  { %1157 = vmatpush1.bf16.msra.mxu1 %v2485_v3  ;;  %v2488_v5 = vld [vmem:[#allocation5 + $0x2c4] ss:$16 sps:$4 sm:$0xff]   ;;  %1117 = vmatprep.subr.bf16.mxu0 %v2486_v4  ;;  %v2491_v7 = vld [vmem:[#allocation5 + $0x2c0] ss:$16 sps:$4 sm:$0xff]   ;;  %p2970_p3 = scmp.lt.s32.totalorder %s2147_s24, %s2147_s24 }
  0x52   :  { %1158 = vmatprep.subr.bf16.mxu1 %v2488_v5  ;;  %v2492_v8 = vld [vmem:[#allocation5 + $0xa4] ss:$16 sps:$4 sm:$0xff]   ;;  %v2496_v10 = vld [vmem:[#allocation5 + $0xa0] ss:$16 sps:$4 sm:$0xff]   ;;  %v2585_v5 = vld [vmem:[#allocation5 + $0xec] ss:$16 sps:$4 sm:$0xff]  }
  0x53   :  { %v2494_v9 = vld [vmem:[#allocation5 + $0x2a4] ss:$16 sps:$4 sm:$0xff]   ;;  %v2497_v11 = vld [vmem:[#allocation5 + $0x2a0] ss:$16 sps:$4 sm:$0xff]  }
  0x54   :  { %1118 = vmatpush1.bf16.msra.mxu0 %v2490_v6  ;;  %v2498_v12 = vld [vmem:[#allocation5 + $0x84] ss:$16 sps:$4 sm:$0xff]   ;;  %v2502_v14 = vld [vmem:[#allocation5 + $0x80] ss:$16 sps:$4 sm:$0xff]  }
  0x55   :  { %1159 = vmatpush1.bf16.msra.mxu1 %v2491_v7  ;;  %1119 = vmatprep.subr.bf16.mxu0 %v2492_v8  ;;  %v2500_v13 = vld [vmem:[#allocation5 + $0x284] ss:$16 sps:$4 sm:$0xff]   ;;  %v2503_v15 = vld [vmem:[#allocation5 + $0x280] ss:$16 sps:$4 sm:$0xff]  }
  0x56   :  { %1160 = vmatprep.subr.bf16.mxu1 %v2494_v9  ;;  %v2504_v16 = vld [vmem:[#allocation5 + $0x64] ss:$16 sps:$4 sm:$0xff]   ;;  %v2508_v18 = vld [vmem:[#allocation5 + $0x60] ss:$16 sps:$4 sm:$0xff]   ;;  %v2583_v9 = vld [vmem:[#allocation5 + $0xe8] ss:$16 sps:$4 sm:$0xff]  }
  0x57   :  { %v2506_v17 = vld [vmem:[#allocation5 + $0x264] ss:$16 sps:$4 sm:$0xff]   ;;  %v2509_v19 = vld [vmem:[#allocation5 + $0x260] ss:$16 sps:$4 sm:$0xff]  }
  0x58   :  { %1120 = vmatpush1.bf16.msra.mxu0 %v2496_v10  ;;  %v2510_v20 = vld [vmem:[#allocation5 + $0x44] ss:$16 sps:$4 sm:$0xff]   ;;  %v2514_v22 = vld [vmem:[#allocation5 + $0x40] ss:$16 sps:$4 sm:$0xff]  }
  0x59   :  { %1161 = vmatpush1.bf16.msra.mxu1 %v2497_v11  ;;  %1121 = vmatprep.subr.bf16.mxu0 %v2498_v12  ;;  %v2512_v21 = vld [vmem:[#allocation5 + $0x244] ss:$16 sps:$4 sm:$0xff]   ;;  %v2515_v23 = vld [vmem:[#allocation5 + $0x240] ss:$16 sps:$4 sm:$0xff]   ;;  %v2591_v11 = vld [vmem:[#allocation5 + $0xcc] ss:$16 sps:$4 sm:$0xff]  }
  0x5a   :  { %1162 = vmatprep.subr.bf16.mxu1 %v2500_v13  ;;  %v2516_v24 = vld [vmem:[#allocation5 + $0x24] ss:$16 sps:$4 sm:$0xff]   ;;  %v2520_v26 = vld [vmem:[#allocation5 + $0x20] ss:$16 sps:$4 sm:$0xff]   ;;  %v2589_v13 = vld [vmem:[#allocation5 + $0xc8] ss:$16 sps:$4 sm:$0xff]  }
  0x5b   :  { %v2518_v25 = vld [vmem:[#allocation5 + $0x224] ss:$16 sps:$4 sm:$0xff]   ;;  %v2521_v27 = vld [vmem:[#allocation5 + $0x220] ss:$16 sps:$4 sm:$0xff]  }
  0x5c   :  { %1122 = vmatpush1.bf16.msra.mxu0 %v2502_v14  ;;  %v2522_v28 = vld [vmem:[#allocation5 + $0x4] ss:$16 sps:$4 sm:$0xff]   ;;  %v2526_v30 = vld [vmem:[#allocation5] ss:$16 sps:$4 sm:$0xff]  }
  0x5d   :  { %1163 = vmatpush1.bf16.msra.mxu1 %v2503_v15  ;;  %1123 = vmatprep.subr.bf16.mxu0 %v2504_v16  ;;  %v2524_v29 = vld [vmem:[#allocation5 + $0x204] ss:$16 sps:$4 sm:$0xff]   ;;  %v2527_v31 = vld [vmem:[#allocation5 + $0x200] ss:$16 sps:$4 sm:$0xff]   ;;  %v2597_v15 = vld [vmem:[#allocation5 + $0xac] ss:$16 sps:$4 sm:$0xff]  }
  0x5e   :  { %1164 = vmatprep.subr.bf16.mxu1 %v2506_v17  ;;  %v2528_v32 = vld [vmem:[#allocation5 + $0x1e4] ss:$16 sps:$4 sm:$0xff]   ;;  %v2532_v34 = vld [vmem:[#allocation5 + $0x1e0] ss:$16 sps:$4 sm:$0xff]   ;;  %v3007_v16 = vmov 0  }
  0x5f   :  { %v2530_v33 = vld [vmem:[#allocation5 + $0x3e4] ss:$16 sps:$4 sm:$0xff]   ;;  %v2533_v35 = vld [vmem:[#allocation5 + $0x3e0] ss:$16 sps:$4 sm:$0xff]  }
  0x60   :  { %1124 = vmatpush1.bf16.msra.mxu0 %v2508_v18  ;;  %v2534_v36 = vld [vmem:[#allocation5 + $0x1c4] ss:$16 sps:$4 sm:$0xff]   ;;  %v2538_v38 = vld [vmem:[#allocation5 + $0x1c0] ss:$16 sps:$4 sm:$0xff]   ;;  %v2595_v18 = vld [vmem:[#allocation5 + $0xa8] ss:$16 sps:$4 sm:$0xff]  }
  0x61   :  { %1165 = vmatpush1.bf16.msra.mxu1 %v2509_v19  ;;  %1125 = vmatprep.subr.bf16.mxu0 %v2510_v20  ;;  %v2536_v37 = vld [vmem:[#allocation5 + $0x3c4] ss:$16 sps:$4 sm:$0xff]   ;;  %v2539_v39 = vld [vmem:[#allocation5 + $0x3c0] ss:$16 sps:$4 sm:$0xff]   ;;  %v2603_v20 = vld [vmem:[#allocation5 + $0x8c] ss:$16 sps:$4 sm:$0xff]  }
  0x62   :  { %1166 = vmatprep.subr.bf16.mxu1 %v2512_v21  ;;  %v2540_v40 = vld [vmem:[#allocation5 + $0x1a4] ss:$16 sps:$4 sm:$0xff]   ;;  %v2544_v42 = vld [vmem:[#allocation5 + $0x1a0] ss:$16 sps:$4 sm:$0xff]  }
  0x63   :  { %v2542_v41 = vld [vmem:[#allocation5 + $0x3a4] ss:$16 sps:$4 sm:$0xff]   ;;  %v2545_v43 = vld [vmem:[#allocation5 + $0x3a0] ss:$16 sps:$4 sm:$0xff]  }
  0x64   :  { %1126 = vmatpush1.bf16.msra.mxu0 %v2514_v22  ;;  %v2546_v44 = vld [vmem:[#allocation5 + $0x184] ss:$16 sps:$4 sm:$0xff]   ;;  %v112_v46 = vld [vmem:[#allocation2] sm:$0xff]  ;;  %v2601_v22 = vld [vmem:[#allocation5 + $0x88] ss:$16 sps:$4 sm:$0xff]  }
  0x65   :  { %1167 = vmatpush1.bf16.msra.mxu1 %v2515_v23  ;;  %1127 = vmatprep.subr.bf16.mxu0 %v2516_v24  ;;  %v2548_v45 = vld [vmem:[#allocation5 + $0x384] ss:$16 sps:$4 sm:$0xff]   ;;  %v3079_v47 = vcombine.high %v112_v46, %v112_v46  ;;  %v2550_v49 = vld [vmem:[#allocation5 + $0x180] ss:$16 sps:$4 sm:$0xff]   ;;  %v3085_v6 = vcombine.low %v112_v46, %v112_v46  ;;  %v2609_v24 = vld [vmem:[#allocation5 + $0x6c] ss:$16 sps:$4 sm:$0xff]  }
  0x66   :  { %1168 = vmatprep.subr.bf16.mxu1 %v2518_v25  ;;  %v113_v48 = vld [vmem:[#allocation2 + $0x8] sm:$0xff]  ;;  %v2551_v50 = vld [vmem:[#allocation5 + $0x380] ss:$16 sps:$4 sm:$0xff]  }
  0x67   :  { %v3081_v51 = vcombine.high %v113_v48, %v113_v48  ;;  %v2552_v52 = vld [vmem:[#allocation5 + $0x164] ss:$16 sps:$4 sm:$0xff]   ;;  %1147 = vmatprep.mubr.bf16.mxu0 %v3079_v47  ;;  %v2556_v54 = vld [vmem:[#allocation5 + $0x160] ss:$16 sps:$4 sm:$0xff]   ;;  %v3087_v7 = vcombine.low %v113_v48, %v113_v48  ;;  %v2635_v46 = vld [vmem:[#allocation5 + $0x1c8] ss:$16 sps:$4 sm:$0xff]  }
  0x68   :  { %1128 = vmatpush1.bf16.msra.mxu0 %v2520_v26  ;;  %v2554_v53 = vld [vmem:[#allocation5 + $0x364] ss:$16 sps:$4 sm:$0xff]   ;;  %v2557_v55 = vld [vmem:[#allocation5 + $0x360] ss:$16 sps:$4 sm:$0xff]   ;;  %v2607_v26 = vld [vmem:[#allocation5 + $0x68] ss:$16 sps:$4 sm:$0xff]  }
  0x69   :  { %1169 = vmatpush1.bf16.msra.mxu1 %v2521_v27  ;;  %1129 = vmatprep.subr.bf16.mxu0 %v2522_v28  ;;  %v2558_v56 = vld [vmem:[#allocation5 + $0x144] ss:$16 sps:$4 sm:$0xff]   ;;  %v2562_v58 = vld [vmem:[#allocation5 + $0x140] ss:$16 sps:$4 sm:$0xff]   ;;  %v2615_v28 = vld [vmem:[#allocation5 + $0x4c] ss:$16 sps:$4 sm:$0xff]  }
  0x6a   :  { %1170 = vmatprep.subr.bf16.mxu1 %v2524_v29  ;;  %1188 = vmatprep.mubr.bf16.mxu1 %v3081_v51  ;;  %v2560_v57 = vld [vmem:[#allocation5 + $0x344] ss:$16 sps:$4 sm:$0xff]   ;;  %v2563_v59 = vld [vmem:[#allocation5 + $0x340] ss:$16 sps:$4 sm:$0xff]   ;;  %v2643_v48 = vld [vmem:[#allocation5 + $0x1ac] ss:$16 sps:$4 sm:$0xff]  }
  0x6b   :  { %v2564_v60 = vld [vmem:[#allocation5 + $0x124] ss:$16 sps:$4 sm:$0xff]   ;;  %v2568_v62 = vld [vmem:[#allocation5 + $0x120] ss:$16 sps:$4 sm:$0xff]  }
  0x6c   :  { %1130 = vmatpush1.bf16.msra.mxu0 %v2526_v30  ;;  %v2566_v61 = vld [vmem:[#allocation5 + $0x324] ss:$16 sps:$4 sm:$0xff]   ;;  %v2569_v63 = vld [vmem:[#allocation5 + $0x320] ss:$16 sps:$4 sm:$0xff]   ;;  %v2613_v30 = vld [vmem:[#allocation5 + $0x48] ss:$16 sps:$4 sm:$0xff]  }
  0x6d   :  { %1171 = vmatpush1.bf16.msra.mxu1 %v2527_v31  ;;  %1131 = vmatprep.subr.bf16.mxu0 %v2528_v32  ;;  %v2570_v0 = vld [vmem:[#allocation5 + $0x104] ss:$16 sps:$4 sm:$0xff]   ;;  %v2574_v2 = vld [vmem:[#allocation5 + $0x100] ss:$16 sps:$4 sm:$0xff]   ;;  %v2621_v32 = vld [vmem:[#allocation5 + $0x2c] ss:$16 sps:$4 sm:$0xff]  }
  0x6e   :  { %1172 = vmatprep.subr.bf16.mxu1 %v2530_v33  ;;  %v2572_v1 = vld [vmem:[#allocation5 + $0x304] ss:$16 sps:$4 sm:$0xff]   ;;  %v2575_v3 = vld [vmem:[#allocation5 + $0x300] ss:$16 sps:$4 sm:$0xff]  }
  0x6f   :  { %v2582_v4 = vld [vmem:[#allocation5 + $0x4e4] ss:$16 sps:$4 sm:$0xff]   ;;  %v2580_v8 = vld [vmem:[#allocation5 + $0x4e0] ss:$16 sps:$4 sm:$0xff]  }
  0x70   :  { %1132 = vmatpush2.bf16.msra.mxu0 %v2532_v34  ;;  %v2588_v10 = vld [vmem:[#allocation5 + $0x4c4] ss:$16 sps:$4 sm:$0xff]   ;;  %v2586_v12 = vld [vmem:[#allocation5 + $0x4c0] ss:$16 sps:$4 sm:$0xff]   ;;  %v2619_v34 = vld [vmem:[#allocation5 + $0x28] ss:$16 sps:$4 sm:$0xff]  }
  0x71   :  { %1173 = vmatpush2.bf16.msra.mxu1 %v2533_v35  ;;  %1133 = vmatprep.subr.bf16.mxu0 %v2534_v36  ;;  %v2594_v14 = vld [vmem:[#allocation5 + $0x4a4] ss:$16 sps:$4 sm:$0xff]   ;;  %v2592_v17 = vld [vmem:[#allocation5 + $0x4a0] ss:$16 sps:$4 sm:$0xff]   ;;  %v2627_v36 = vld [vmem:[#allocation5 + $0xc] ss:$16 sps:$4 sm:$0xff]  }
  0x72   :  { %1174 = vmatprep.subr.bf16.mxu1 %v2536_v37  ;;  %v2600_v19 = vld [vmem:[#allocation5 + $0x484] ss:$16 sps:$4 sm:$0xff]   ;;  %v2598_v21 = vld [vmem:[#allocation5 + $0x480] ss:$16 sps:$4 sm:$0xff]  }
  0x73   :  { %v2606_v23 = vld [vmem:[#allocation5 + $0x464] ss:$16 sps:$4 sm:$0xff]   ;;  %v2604_v25 = vld [vmem:[#allocation5 + $0x460] ss:$16 sps:$4 sm:$0xff]  }
  0x74   :  { %1134 = vmatpush2.bf16.msra.mxu0 %v2538_v38  ;;  %v2612_v27 = vld [vmem:[#allocation5 + $0x444] ss:$16 sps:$4 sm:$0xff]   ;;  %v2610_v29 = vld [vmem:[#allocation5 + $0x440] ss:$16 sps:$4 sm:$0xff]   ;;  %v2625_v38 = vld [vmem:[#allocation5 + $0x8] ss:$16 sps:$4 sm:$0xff]  }
  0x75   :  { %1175 = vmatpush2.bf16.msra.mxu1 %v2539_v39  ;;  %1135 = vmatprep.subr.bf16.mxu0 %v2540_v40  ;;  %v2618_v31 = vld [vmem:[#allocation5 + $0x424] ss:$16 sps:$4 sm:$0xff]   ;;  %v2616_v33 = vld [vmem:[#allocation5 + $0x420] ss:$16 sps:$4 sm:$0xff]   ;;  %v2631_v39 = vld [vmem:[#allocation5 + $0x1ec] ss:$16 sps:$4 sm:$0xff]  }
  0x76   :  { %1176 = vmatprep.subr.bf16.mxu1 %v2542_v41  ;;  %v2624_v35 = vld [vmem:[#allocation5 + $0x404] ss:$16 sps:$4 sm:$0xff]   ;;  %v2622_v37 = vld [vmem:[#allocation5 + $0x400] ss:$16 sps:$4 sm:$0xff]   ;;  %v2634_v40 = vld [vmem:[#allocation5 + $0x2ec] ss:$16 sps:$4 sm:$0xff]  }
  0x77   :  { %v3093_v41 = vld [vmem:[#allocation2 + $0x10] ss:$0 sps:$4 sm:$0xff]  }
  0x78   :  { %1136 = vmatpush2.bf16.msra.mxu0 %v2544_v42  ;;  %v2629_v42 = vld [vmem:[#allocation5 + $0x1e8] ss:$16 sps:$4 sm:$0xff]  }
  0x79   :  { %1177 = vmatpush2.bf16.msra.mxu1 %v2545_v43  ;;  %1137 = vmatprep.subr.bf16.mxu0 %v2546_v44  ;;  %v2632_v43 = vld [vmem:[#allocation5 + $0x2e8] ss:$16 sps:$4 sm:$0xff]   ;;  %v2637_v44 = vld [vmem:[#allocation5 + $0x1cc] ss:$16 sps:$4 sm:$0xff]  }
  0x7a   :  { %1178 = vmatprep.subr.bf16.mxu1 %v2548_v45  ;;  %v2640_v45 = vld [vmem:[#allocation5 + $0x2cc] ss:$16 sps:$4 sm:$0xff]  }
  0x7c   :  { %1138 = vmatpush2.bf16.msra.mxu0 %v2550_v49  ;;  %v2646_v49 = vld [vmem:[#allocation5 + $0x2ac] ss:$16 sps:$4 sm:$0xff]  }
  0x7d   :  { %1179 = vmatpush2.bf16.msra.mxu1 %v2551_v50  ;;  %1139 = vmatprep.subr.bf16.mxu0 %v2552_v52  ;;  %v2641_v50 = vld [vmem:[#allocation5 + $0x1a8] ss:$16 sps:$4 sm:$0xff]  }
  0x7e   :  { %1180 = vmatprep.subr.bf16.mxu1 %v2554_v53  ;;  %v2644_v52 = vld [vmem:[#allocation5 + $0x2a8] ss:$16 sps:$4 sm:$0xff]   ;;  %v2649_v53 = vld [vmem:[#allocation5 + $0x18c] ss:$16 sps:$4 sm:$0xff]  }
  0x80   :  { %1140 = vmatpush2.bf16.msra.mxu0 %v2556_v54  ;;  %v2652_v54 = vld [vmem:[#allocation5 + $0x28c] ss:$16 sps:$4 sm:$0xff]  }
  0x81   :  { %1181 = vmatpush2.bf16.msra.mxu1 %v2557_v55  ;;  %1141 = vmatprep.subr.bf16.mxu0 %v2558_v56  ;;  %v2647_v55 = vld [vmem:[#allocation5 + $0x188] ss:$16 sps:$4 sm:$0xff]  }
  0x82   :  { %1182 = vmatprep.subr.bf16.mxu1 %v2560_v57  ;;  %v2650_v56 = vld [vmem:[#allocation5 + $0x288] ss:$16 sps:$4 sm:$0xff]   ;;  %v2655_v57 = vld [vmem:[#allocation5 + $0x16c] ss:$16 sps:$4 sm:$0xff]  }
  0x84   :  { %1142 = vmatpush2.bf16.msra.mxu0 %v2562_v58  ;;  %v2658_v58 = vld [vmem:[#allocation5 + $0x26c] ss:$16 sps:$4 sm:$0xff]  }
  0x85   :  { %1183 = vmatpush2.bf16.msra.mxu1 %v2563_v59  ;;  %1143 = vmatprep.subr.bf16.mxu0 %v2564_v60  ;;  %v2653_v59 = vld [vmem:[#allocation5 + $0x168] ss:$16 sps:$4 sm:$0xff]  }
  0x86   :  { %1184 = vmatprep.subr.bf16.mxu1 %v2566_v61  ;;  %v2656_v60 = vld [vmem:[#allocation5 + $0x268] ss:$16 sps:$4 sm:$0xff]   ;;  %v2664_v61 = vld [vmem:[#allocation5 + $0x24c] ss:$16 sps:$4 sm:$0xff]  }
  0x88   :  { %1144 = vmatpush2.bf16.msra.mxu0 %v2568_v62  ;;  %v2659_v62 = vld [vmem:[#allocation5 + $0x148] ss:$16 sps:$4 sm:$0xff]  }
  0x89   :  { %1185 = vmatpush2.bf16.msra.mxu1 %v2569_v63  ;;  %1145 = vmatprep.subr.bf16.mxu0 %v2570_v0  ;;  %v2662_v63 = vld [vmem:[#allocation5 + $0x248] ss:$16 sps:$4 sm:$0xff]   ;;  %v2667_v0 = vld [vmem:[#allocation5 + $0x12c] ss:$16 sps:$4 sm:$0xff]  }
  0x8a   :  { %1186 = vmatprep.subr.bf16.mxu1 %v2572_v1  ;;  %v2670_v1 = vld [vmem:[#allocation5 + $0x22c] ss:$16 sps:$4 sm:$0xff]  }
  0x8c   :  { %1146 = vmatpush2.bf16.msra.mxu0 %v2574_v2  ;;  %v2665_v2 = vld [vmem:[#allocation5 + $0x128] ss:$16 sps:$4 sm:$0xff]  }
  0x8d   :  { %1187 = vmatpush2.bf16.msra.mxu1 %v2575_v3  ;;  %1197 = vmatprep.subr.bf16.mxu0 %v2582_v4  ;;  %v2668_v3 = vld [vmem:[#allocation5 + $0x228] ss:$16 sps:$4 sm:$0xff]   ;;  %v2673_v4 = vld [vmem:[#allocation5 + $0x10c] ss:$16 sps:$4 sm:$0xff]  }
  0x8e   :  { %1238 = vmatprep.subr.bf16.mxu1 %v2585_v5  ;;  %v2676_v5 = vld [vmem:[#allocation5 + $0x20c] ss:$16 sps:$4 sm:$0xff]  }
  0x8f   :  { %1148 = vmatmul.mubr.bf16.vlgmr.msra.gmra.mxu0 %v3085_v6 }
  0x90   :  { %1189 = vmatmul.mubr.bf16.vlgmr.msra.gmra.mxu1 %v3087_v7  ;;  %1198 = vmatpush1.bf16.msra.mxu0 %v2580_v8  ;;  %v2671_v8 = vld [vmem:[#allocation5 + $0x108] ss:$16 sps:$4 sm:$0xff]  }
  0x91   :  { %1239 = vmatpush1.bf16.msra.mxu1 %v2583_v9  ;;  %1199 = vmatprep.subr.bf16.mxu0 %v2588_v10  ;;  %v2674_v9 = vld [vmem:[#allocation5 + $0x208] ss:$16 sps:$4 sm:$0xff]   ;;  %v2679_v10 = vld [vmem:[#allocation5 + $0x3ec] ss:$16 sps:$4 sm:$0xff]  }
  0x92   :  { %1240 = vmatprep.subr.bf16.mxu1 %v2591_v11  ;;  %1229 = vmatprep.mubr.bf16.mxu0 %v3007_v16  ;;  %v2682_v11 = vld [vmem:[#allocation5 + $0x4ec] ss:$16 sps:$4 sm:$0xff]  }
  0x93   :  { %1270 = vmatprep.mubr.bf16.mxu1 %v3079_v47  ;;  %v2638_v47 = vld [vmem:[#allocation5 + $0x2c8] ss:$16 sps:$4 sm:$0xff]  }
  0x94   :  { %1200 = vmatpush1.bf16.msra.mxu0 %v2586_v12  ;;  %v2677_v12 = vld [vmem:[#allocation5 + $0x3e8] ss:$16 sps:$4 sm:$0xff]  }
  0x95   :  { %1241 = vmatpush1.bf16.msra.mxu1 %v2589_v13  ;;  %1201 = vmatprep.subr.bf16.mxu0 %v2594_v14  ;;  %v2680_v13 = vld [vmem:[#allocation5 + $0x4e8] ss:$16 sps:$4 sm:$0xff]   ;;  %v2685_v14 = vld [vmem:[#allocation5 + $0x3cc] ss:$16 sps:$4 sm:$0xff]  }
  0x96   :  { %1242 = vmatprep.subr.bf16.mxu1 %v2597_v15  ;;  %v2688_v15 = vld [vmem:[#allocation5 + $0x4cc] ss:$16 sps:$4 sm:$0xff]  }
  0x98   :  { %1202 = vmatpush1.bf16.msra.mxu0 %v2592_v17  ;;  %v2683_v17 = vld [vmem:[#allocation5 + $0x3c8] ss:$16 sps:$4 sm:$0xff]  }
  0x99   :  { %1243 = vmatpush1.bf16.msra.mxu1 %v2595_v18  ;;  %1203 = vmatprep.subr.bf16.mxu0 %v2600_v19  ;;  %v2686_v18 = vld [vmem:[#allocation5 + $0x4c8] ss:$16 sps:$4 sm:$0xff]   ;;  %v2691_v19 = vld [vmem:[#allocation5 + $0x3ac] ss:$16 sps:$4 sm:$0xff]  }
  0x9a   :  { %1244 = vmatprep.subr.bf16.mxu1 %v2603_v20  ;;  %v2694_v20 = vld [vmem:[#allocation5 + $0x4ac] ss:$16 sps:$4 sm:$0xff]  }
  0x9c   :  { %1204 = vmatpush1.bf16.msra.mxu0 %v2598_v21  ;;  %v2689_v21 = vld [vmem:[#allocation5 + $0x3a8] ss:$16 sps:$4 sm:$0xff]  }
  0x9d   :  { %1245 = vmatpush1.bf16.msra.mxu1 %v2601_v22  ;;  %1205 = vmatprep.subr.bf16.mxu0 %v2606_v23  ;;  %v2692_v22 = vld [vmem:[#allocation5 + $0x4a8] ss:$16 sps:$4 sm:$0xff]   ;;  %v2697_v23 = vld [vmem:[#allocation5 + $0x38c] ss:$16 sps:$4 sm:$0xff]  }
  0x9e   :  { %1246 = vmatprep.subr.bf16.mxu1 %v2609_v24  ;;  %v2700_v24 = vld [vmem:[#allocation5 + $0x48c] ss:$16 sps:$4 sm:$0xff]  }
  0xa0   :  { %1206 = vmatpush1.bf16.msra.mxu0 %v2604_v25  ;;  %v2695_v25 = vld [vmem:[#allocation5 + $0x388] ss:$16 sps:$4 sm:$0xff]  }
  0xa1   :  { %1247 = vmatpush1.bf16.msra.mxu1 %v2607_v26  ;;  %1207 = vmatprep.subr.bf16.mxu0 %v2612_v27  ;;  %v2703_v26 = vld [vmem:[#allocation5 + $0x36c] ss:$16 sps:$4 sm:$0xff]  }
  0xa2   :  { %1248 = vmatprep.subr.bf16.mxu1 %v2615_v28  ;;  %v2706_v27 = vld [vmem:[#allocation5 + $0x46c] ss:$16 sps:$4 sm:$0xff]   ;;  %v2701_v28 = vld [vmem:[#allocation5 + $0x368] ss:$16 sps:$4 sm:$0xff]  }
  0xa4   :  { %1208 = vmatpush1.bf16.msra.mxu0 %v2610_v29  ;;  %v2704_v29 = vld [vmem:[#allocation5 + $0x468] ss:$16 sps:$4 sm:$0xff]  }
  0xa5   :  { %1249 = vmatpush1.bf16.msra.mxu1 %v2613_v30  ;;  %1209 = vmatprep.subr.bf16.mxu0 %v2618_v31  ;;  %v2709_v30 = vld [vmem:[#allocation5 + $0x34c] ss:$16 sps:$4 sm:$0xff]   ;;  %v2707_v31 = vld [vmem:[#allocation5 + $0x348] ss:$16 sps:$4 sm:$0xff]  }
  0xa6   :  { %1250 = vmatprep.subr.bf16.mxu1 %v2621_v32  ;;  %v2710_v32 = vld [vmem:[#allocation5 + $0x448] ss:$16 sps:$4 sm:$0xff]  }
  0xa8   :  { %1210 = vmatpush1.bf16.msra.mxu0 %v2616_v33  ;;  %v2715_v33 = vld [vmem:[#allocation5 + $0x32c] ss:$16 sps:$4 sm:$0xff]  }
  0xa9   :  { %1251 = vmatpush1.bf16.msra.mxu1 %v2619_v34  ;;  %1211 = vmatprep.subr.bf16.mxu0 %v2624_v35  ;;  %v2718_v34 = vld [vmem:[#allocation5 + $0x42c] ss:$16 sps:$4 sm:$0xff]   ;;  %v2713_v35 = vld [vmem:[#allocation5 + $0x328] ss:$16 sps:$4 sm:$0xff]  }
  0xaa   :  { %1252 = vmatprep.subr.bf16.mxu1 %v2627_v36  ;;  %v2716_v36 = vld [vmem:[#allocation5 + $0x428] ss:$16 sps:$4 sm:$0xff]  }
  0xac   :  { %1212 = vmatpush1.bf16.msra.mxu0 %v2622_v37  ;;  %v2721_v37 = vld [vmem:[#allocation5 + $0x30c] ss:$16 sps:$4 sm:$0xff]  }
  0xad   :  { %1253 = vmatpush1.bf16.msra.mxu1 %v2625_v38  ;;  %1279 = vmatprep.subr.bf16.mxu0 %v2634_v40  ;;  %v2724_v38 = vld [vmem:[#allocation5 + $0x40c] ss:$16 sps:$4 sm:$0xff]   ;;  %v2722_v40 = vld [vmem:[#allocation5 + $0x408] ss:$16 sps:$4 sm:$0xff]  }
  0xae   :  { %1254 = vmatprep.subr.bf16.mxu1 %v2631_v39  ;;  %v2719_v39 = vld [vmem:[#allocation5 + $0x308] ss:$16 sps:$4 sm:$0xff]  }
  0xaf   :  { %1230 = vmatmul.mubr.bf16.vlgmr.msra.gmra.mxu0 %v3093_v41 }
  0xb0   :  { %1280 = vmatpush1.bf16.msra.mxu0 %v2632_v43  ;;  %1311 = vmatprep.mubr.bf16.mxu0 %v3081_v51  ;;  %v2661_v51 = vld [vmem:[#allocation5 + $0x14c] ss:$16 sps:$4 sm:$0xff]  }
  0xb1   :  { %1255 = vmatpush2.bf16.msra.mxu1 %v2629_v42  ;;  %1281 = vmatprep.subr.bf16.mxu0 %v2640_v45  ;;  %v2727_v42 = vld [vmem:[#allocation8 + $0x74] ss:$8 sps:$4 sm:$0xff]   ;;  %v2725_v43 = vld [vmem:[#allocation8 + $0x70] ss:$8 sps:$4 sm:$0xff]   ;;  %v2728_v45 = vld [vmem:[#allocation8 + $0x60] ss:$8 sps:$4 sm:$0xff]  }
  0xb2   :  { %1256 = vmatprep.subr.bf16.mxu1 %v2637_v44  ;;  %v2730_v44 = vld [vmem:[#allocation8 + $0x64] ss:$8 sps:$4 sm:$0xff]  }
  0xb4   :  { %1282 = vmatpush1.bf16.msra.mxu0 %v2638_v47  ;;  %v2731_v47 = vld [vmem:[#allocation8 + $0x50] ss:$8 sps:$4 sm:$0xff]  }
  0xb5   :  { %1257 = vmatpush2.bf16.msra.mxu1 %v2635_v46  ;;  %1283 = vmatprep.subr.bf16.mxu0 %v2646_v49  ;;  %v2733_v46 = vld [vmem:[#allocation8 + $0x54] ss:$8 sps:$4 sm:$0xff]   ;;  %v2734_v49 = vld [vmem:[#allocation8 + $0x40] ss:$8 sps:$4 sm:$0xff]  }
  0xb6   :  { %1258 = vmatprep.subr.bf16.mxu1 %v2643_v48  ;;  %v2736_v48 = vld [vmem:[#allocation8 + $0x44] ss:$8 sps:$4 sm:$0xff]  }
  0xb8   :  { %1284 = vmatpush1.bf16.msra.mxu0 %v2644_v52  ;;  %v2773_v52 = vld [vmem:[#allocation8 + $0x170] ss:$8 sps:$4 sm:$0xff]  }
  0xb9   :  { %1259 = vmatpush2.bf16.msra.mxu1 %v2641_v50  ;;  %1285 = vmatprep.subr.bf16.mxu0 %v2652_v54  ;;  %v2739_v50 = vld [vmem:[#allocation8 + $0x34] ss:$8 sps:$4 sm:$0xff]   ;;  %v2778_v54 = vld [vmem:[#allocation8 + $0x164] ss:$8 sps:$4 sm:$0xff]  }
  0xba   :  { %1260 = vmatprep.subr.bf16.mxu1 %v2649_v53  ;;  %v2775_v53 = vld [vmem:[#allocation8 + $0x174] ss:$8 sps:$4 sm:$0xff]  }
  0xbc   :  { %1286 = vmatpush1.bf16.msra.mxu0 %v2650_v56  ;;  %v2781_v56 = vld [vmem:[#allocation8 + $0x154] ss:$8 sps:$4 sm:$0xff]  }
  0xbd   :  { %1261 = vmatpush2.bf16.msra.mxu1 %v2647_v55  ;;  %1287 = vmatprep.subr.bf16.mxu0 %v2658_v58  ;;  %v2742_v55 = vld [vmem:[#allocation8 + $0x24] ss:$8 sps:$4 sm:$0xff]   ;;  %v2779_v58 = vld [vmem:[#allocation8 + $0x150] ss:$8 sps:$4 sm:$0xff]  }
  0xbe   :  { %1262 = vmatprep.subr.bf16.mxu1 %v2655_v57  ;;  %v2740_v57 = vld [vmem:[#allocation8 + $0x20] ss:$8 sps:$4 sm:$0xff]  }
  0xc0   :  { %1288 = vmatpush1.bf16.msra.mxu0 %v2656_v60  ;;  %v2784_v60 = vld [vmem:[#allocation8 + $0x144] ss:$8 sps:$4 sm:$0xff]  }
  0xc1   :  { %1263 = vmatpush2.bf16.msra.mxu1 %v2653_v59  ;;  %1289 = vmatprep.subr.bf16.mxu0 %v2664_v61  ;;  %v2745_v59 = vld [vmem:[#allocation8 + $0x14] ss:$8 sps:$4 sm:$0xff]   ;;  %v2782_v61 = vld [vmem:[#allocation8 + $0x140] ss:$8 sps:$4 sm:$0xff]  }
  0xc2   :  { %1264 = vmatprep.subr.bf16.mxu1 %v2661_v51  ;;  %v2743_v51 = vld [vmem:[#allocation8 + $0x10] ss:$8 sps:$4 sm:$0xff]  }
  0xc4   :  { %1290 = vmatpush1.bf16.msra.mxu0 %v2662_v63  ;;  %v2787_v63 = vld [vmem:[#allocation8 + $0x134] ss:$8 sps:$4 sm:$0xff]  }
  0xc5   :  { %1265 = vmatpush2.bf16.msra.mxu1 %v2659_v62  ;;  %1291 = vmatprep.subr.bf16.mxu0 %v2670_v1  ;;  %v2748_v62 = vld [vmem:[#allocation8 + $0x4] ss:$8 sps:$4 sm:$0xff]   ;;  %v2785_v1 = vld [vmem:[#allocation8 + $0x130] ss:$8 sps:$4 sm:$0xff]  }
  0xc6   :  { %1266 = vmatprep.subr.bf16.mxu1 %v2667_v0  ;;  %v2746_v0 = vld [vmem:[#allocation8] ss:$8 sps:$4 sm:$0xff]  }
  0xc8   :  { %1292 = vmatpush1.bf16.msra.mxu0 %v2668_v3  ;;  %v2749_v3 = vld [vmem:[#allocation8 + $0xf0] ss:$8 sps:$4 sm:$0xff]  }
  0xc9   :  { %1267 = vmatpush2.bf16.msra.mxu1 %v2665_v2  ;;  %1293 = vmatprep.subr.bf16.mxu0 %v2676_v5  ;;  %v2751_v2 = vld [vmem:[#allocation8 + $0xf4] ss:$8 sps:$4 sm:$0xff]   ;;  %v2790_v5 = vld [vmem:[#allocation8 + $0x124] ss:$8 sps:$4 sm:$0xff]  }
  0xca   :  { %1268 = vmatprep.subr.bf16.mxu1 %v2673_v4  ;;  %v2754_v4 = vld [vmem:[#allocation8 + $0xe4] ss:$8 sps:$4 sm:$0xff]  }
  0xcc   :  { %1294 = vmatpush1.bf16.msra.mxu0 %v2674_v9  ;;  %v2752_v9 = vld [vmem:[#allocation8 + $0xe0] ss:$8 sps:$4 sm:$0xff]  }
  0xcd   :  { %1269 = vmatpush2.bf16.msra.mxu1 %v2671_v8  ;;  %1295 = vmatprep.subr.bf16.mxu0 %v2679_v10  ;;  %v2788_v8 = vld [vmem:[#allocation8 + $0x120] ss:$8 sps:$4 sm:$0xff]   ;;  %v2757_v10 = vld [vmem:[#allocation8 + $0xd4] ss:$8 sps:$4 sm:$0xff]  }
  0xce   :  { %1320 = vmatprep.subr.bf16.mxu1 %v2682_v11  ;;  %v2793_v11 = vld [vmem:[#allocation8 + $0x114] ss:$8 sps:$4 sm:$0xff]  }
  0xd0   :  { %1271 = vmatmul.mubr.bf16.vlgmr.msra.gmra.mxu1 %v3085_v6  ;;  %1296 = vmatpush2.bf16.msra.mxu0 %v2677_v12  ;;  %v2698_v6 = vld [vmem:[#allocation5 + $0x488] ss:$16 sps:$4 sm:$0xff]   ;;  %v2791_v12 = vld [vmem:[#allocation8 + $0x110] ss:$8 sps:$4 sm:$0xff]  }
  0xd1   :  { %1321 = vmatpush1.bf16.msra.mxu1 %v2680_v13  ;;  %1297 = vmatprep.subr.bf16.mxu0 %v2685_v14  ;;  %v2755_v13 = vld [vmem:[#allocation8 + $0xd0] ss:$8 sps:$4 sm:$0xff]   ;;  %v2760_v14 = vld [vmem:[#allocation8 + $0xc4] ss:$8 sps:$4 sm:$0xff]  }
  0xd2   :  { %1322 = vmatprep.subr.bf16.mxu1 %v2688_v15  ;;  %1352 = vmatprep.mubr.bf16.mxu1 %v3007_v16  ;;  %v2712_v16 = vld [vmem:[#allocation5 + $0x44c] ss:$16 sps:$4 sm:$0xff]  }
  0xd3   :  { %v2794_v15 = vld [vmem:[#allocation8 + $0x100] ss:$8 sps:$4 sm:$0xff]  }
  0xd4   :  { %1298 = vmatpush2.bf16.msra.mxu0 %v2683_v17  ;;  %v2796_v17 = vld [vmem:[#allocation8 + $0x104] ss:$8 sps:$4 sm:$0xff]  }
  0xd5   :  { %1323 = vmatpush1.bf16.msra.mxu1 %v2686_v18  ;;  %1299 = vmatprep.subr.bf16.mxu0 %v2691_v19  ;;  %v2799_v18 = vld [vmem:[#allocation8 + $0x1f4] ss:$8 sps:$4 sm:$0xff]   ;;  %v2758_v19 = vld [vmem:[#allocation8 + $0xc0] ss:$8 sps:$4 sm:$0xff]  }
  0xd6   :  { %1324 = vmatprep.subr.bf16.mxu1 %v2694_v20  ;;  %v2797_v20 = vld [vmem:[#allocation8 + $0x1f0] ss:$8 sps:$4 sm:$0xff]  }
  0xd8   :  { %1300 = vmatpush2.bf16.msra.mxu0 %v2689_v21  ;;  %v2763_v21 = vld [vmem:[#allocation8 + $0xb4] ss:$8 sps:$4 sm:$0xff]  }
  0xd9   :  { %1325 = vmatpush1.bf16.msra.mxu1 %v2692_v22  ;;  %1301 = vmatprep.subr.bf16.mxu0 %v2697_v23  ;;  %v2802_v22 = vld [vmem:[#allocation8 + $0x1e4] ss:$8 sps:$4 sm:$0xff]   ;;  %v2761_v23 = vld [vmem:[#allocation8 + $0xb0] ss:$8 sps:$4 sm:$0xff]  }
  0xda   :  { %1326 = vmatprep.subr.bf16.mxu1 %v2700_v24  ;;  %v2800_v24 = vld [vmem:[#allocation8 + $0x1e0] ss:$8 sps:$4 sm:$0xff]  }
  0xdc   :  { %1302 = vmatpush2.bf16.msra.mxu0 %v2695_v25  ;;  %v2766_v25 = vld [vmem:[#allocation8 + $0xa4] ss:$8 sps:$4 sm:$0xff]  }
  0xdd   :  { %1327 = vmatpush1.bf16.msra.mxu1 %v2698_v6  ;;  %1303 = vmatprep.subr.bf16.mxu0 %v2703_v26  ;;  %v2805_v6 = vld [vmem:[#allocation8 + $0x1d4] ss:$8 sps:$4 sm:$0xff]   ;;  %v2764_v26 = vld [vmem:[#allocation8 + $0xa0] ss:$8 sps:$4 sm:$0xff]  }
  0xde   :  { %1328 = vmatprep.subr.bf16.mxu1 %v2706_v27  ;;  %v2803_v27 = vld [vmem:[#allocation8 + $0x1d0] ss:$8 sps:$4 sm:$0xff]  }
  0xe0   :  { %1304 = vmatpush2.bf16.msra.mxu0 %v2701_v28  ;;  %v2769_v28 = vld [vmem:[#allocation8 + $0x94] ss:$8 sps:$4 sm:$0xff]  }
  0xe1   :  { %1329 = vmatpush1.bf16.msra.mxu1 %v2704_v29  ;;  %1305 = vmatprep.subr.bf16.mxu0 %v2709_v30  ;;  %v2808_v29 = vld [vmem:[#allocation8 + $0x1c4] ss:$8 sps:$4 sm:$0xff]   ;;  %v2767_v30 = vld [vmem:[#allocation8 + $0x90] ss:$8 sps:$4 sm:$0xff]  }
  0xe2   :  { %1330 = vmatprep.subr.bf16.mxu1 %v2712_v16  ;;  %v2806_v16 = vld [vmem:[#allocation8 + $0x1c0] ss:$8 sps:$4 sm:$0xff]  }
  0xe4   :  { %1306 = vmatpush2.bf16.msra.mxu0 %v2707_v31  ;;  %v2772_v31 = vld [vmem:[#allocation8 + $0x84] ss:$8 sps:$4 sm:$0xff]  }
  0xe5   :  { %1331 = vmatpush1.bf16.msra.mxu1 %v2710_v32  ;;  %1307 = vmatprep.subr.bf16.mxu0 %v2715_v33  ;;  %v2811_v32 = vld [vmem:[#allocation8 + $0x1b4] ss:$8 sps:$4 sm:$0xff]   ;;  %v2770_v33 = vld [vmem:[#allocation8 + $0x80] ss:$8 sps:$4 sm:$0xff]  }
  0xe6   :  { %1332 = vmatprep.subr.bf16.mxu1 %v2718_v34  ;;  %v2809_v34 = vld [vmem:[#allocation8 + $0x1b0] ss:$8 sps:$4 sm:$0xff]  }
  0xe8   :  { %1308 = vmatpush2.bf16.msra.mxu0 %v2713_v35  ;;  %v2814_v35 = vld [vmem:[#allocation8 + $0x1a4] ss:$8 sps:$4 sm:$0xff]  }
  0xe9   :  { %1333 = vmatpush1.bf16.msra.mxu1 %v2716_v36  ;;  %1309 = vmatprep.subr.bf16.mxu0 %v2721_v37  ;;  %v2812_v36 = vld [vmem:[#allocation8 + $0x1a0] ss:$8 sps:$4 sm:$0xff]   ;;  %v2817_v37 = vld [vmem:[#allocation8 + $0x194] ss:$8 sps:$4 sm:$0xff]  }
  0xea   :  { %1334 = vmatprep.subr.bf16.mxu1 %v2724_v38  ;;  %v2815_v38 = vld [vmem:[#allocation8 + $0x190] ss:$8 sps:$4 sm:$0xff]  }
  0xec   :  { %1310 = vmatpush2.bf16.msra.mxu0 %v2719_v39  ;;  %v2820_v39 = vld [vmem:[#allocation8 + $0x184] ss:$8 sps:$4 sm:$0xff]  }
  0xed   :  { %1335 = vmatpush1.bf16.msra.mxu1 %v2722_v40  ;;  %1765 = vmatprep.subr.bf16.mxu0 %v2727_v42  ;;  %v2818_v40 = vld [vmem:[#allocation8 + $0x180] ss:$8 sps:$4 sm:$0xff]  }
  0xee   :  { %1806 = vmatprep.subr.bf16.mxu1 %v2775_v53 }
  0xef   :  { %1312 = vmatmul.mubr.bf16.vlgmr.msra.gmra.mxu0 %v3087_v7  ;;  %v2737_v7 = vld [vmem:[#allocation8 + $0x30] ss:$8 sps:$4 sm:$0xff]  }
  0xf0   :  { %1353 = vmatmul.mubr.bf16.vlgmr.msra.gmra.mxu1 %v3093_v41  ;;  %1766 = vmatpush1.bf16.msra.mxu0 %v2725_v43  ;;  %v2776_v41 = vld [vmem:[#allocation8 + $0x160] ss:$8 sps:$4 sm:$0xff]  }
  0xf1   :  { %1767 = vmatprep.subr.bf16.mxu0 %v2730_v44  ;;  %1807 = vmatpush1.bf16.msra.mxu1 %v2773_v52 }
  0xf2   :  { %1808 = vmatprep.subr.bf16.mxu1 %v2778_v54  ;;  %v275_v54 = vld [vmem:[#allocation7] sm:$0xf] }
  0xf4   :  { %1768 = vmatpush1.bf16.msra.mxu0 %v2728_v45 }
  0xf5   :  { %1769 = vmatprep.subr.bf16.mxu0 %v2733_v46  ;;  %1809 = vmatpush1.bf16.msra.mxu1 %v2776_v41 }
  0xf6   :  { %1810 = vmatprep.subr.bf16.mxu1 %v2781_v56 }
  0xf8   :  { %1770 = vmatpush1.bf16.msra.mxu0 %v2731_v47 }
  0xf9   :  { %1771 = vmatprep.subr.bf16.mxu0 %v2736_v48  ;;  %1811 = vmatpush1.bf16.msra.mxu1 %v2779_v58 }
  0xfa   :  { %1812 = vmatprep.subr.bf16.mxu1 %v2784_v60 }
  0xfc   :  { %1772 = vmatpush1.bf16.msra.mxu0 %v2734_v49 }
  0xfd   :  { %1773 = vmatprep.subr.bf16.mxu0 %v2739_v50  ;;  %1813 = vmatpush1.bf16.msra.mxu1 %v2782_v61  ;;  %v277_v50 = vlaneseq }
  0xfe   :  { %1814 = vmatprep.subr.bf16.mxu1 %v2787_v63 }
  0xff   :  { %v3101_v52 = vshrl.u32 %v277_v50, 7  ;;  %v3008_v50 = vmov 0.0  }
 0x100   :  { %1774 = vmatpush1.bf16.msra.mxu0 %v2737_v7 }
 0x101   :  { %1775 = vmatprep.subr.bf16.mxu0 %v2742_v55  ;;  %1815 = vmatpush1.bf16.msra.mxu1 %v2785_v1  ;;  %v279_v53 = vsub.s32 0, %v3101_v52  ;;  %v283_v7 = vsub.s32 1, %v3101_v52 }
 0x102   :  { %1816 = vmatprep.subr.bf16.mxu1 %v2790_v5 }
 0x103   :  { %v280_v41 = vrot.slane %v275_v54, %v279_v53  ;;  %v284_v55 = vrot.slane %v275_v54, %v283_v7 }
 0x104   :  { %1776 = vmatpush1.bf16.msra.mxu0 %v2740_v57 }
 0x105   :  { %1777 = vmatprep.subr.bf16.mxu0 %v2745_v59  ;;  %1817 = vmatpush1.bf16.msra.mxu1 %v2788_v8 }
 0x106   :  { %1818 = vmatprep.subr.bf16.mxu1 %v2793_v11  ;;  %v287_v11 = vsub.s32 2, %v3101_v52 }
 0x108   :  { %1778 = vmatpush1.bf16.msra.mxu0 %v2743_v51 }
 0x109   :  { %1779 = vmatprep.subr.bf16.mxu0 %v2748_v62  ;;  %1819 = vmatpush1.bf16.msra.mxu1 %v2791_v12  ;;  %v291_v12 = vsub.s32 3, %v3101_v52  ;;  %v2844_v52 = vld [vmem:[#allocation11] sm:$0xff]  }
 0x10a   :  { %1820 = vmatprep.subr.bf16.mxu1 %v2796_v17 }
 0x10c   :  { %1780 = vmatpush1.bf16.msra.mxu0 %v2746_v0 }
 0x10d   :  { %1781 = vmatprep.subr.bf16.mxu0 %v2751_v2  ;;  %1821 = vmatpush1.bf16.msra.mxu1 %v2794_v15 }
 0x10e   :  { %1822 = vmatprep.subr.bf16.mxu1 %v2799_v18 }
 0x110   :  { %1782 = vmatpush2.bf16.msra.mxu0 %v2749_v3 }
 0x111   :  { %1783 = vmatprep.subr.bf16.mxu0 %v2754_v4  ;;  %1823 = vmatpush2.bf16.msra.mxu1 %v2797_v20 }
 0x112   :  { %1824 = vmatprep.subr.bf16.mxu1 %v2802_v22 }
 0x114   :  { %1784 = vmatpush2.bf16.msra.mxu0 %v2752_v9 }
 0x115   :  { %1785 = vmatprep.subr.bf16.mxu0 %v2757_v10  ;;  %1825 = vmatpush2.bf16.msra.mxu1 %v2800_v24 }
 0x116   :  { %1826 = vmatprep.subr.bf16.mxu1 %v2805_v6 }
 0x118   :  { %1786 = vmatpush2.bf16.msra.mxu0 %v2755_v13  ;;  %v288_v13 = vrot.slane %v275_v54, %v287_v11 }
 0x119   :  { %1787 = vmatprep.subr.bf16.mxu0 %v2760_v14  ;;  %1827 = vmatpush2.bf16.msra.mxu1 %v2803_v27  ;;  %v292_v14 = vrot.slane %v275_v54, %v291_v12  ;;  %v2838_v54 = vld [vmem:[#allocation11 + $0x30] sm:$0xff]  }
 0x11a   :  { %1828 = vmatprep.subr.bf16.mxu1 %v2808_v29 }
 0x11c   :  { %1788 = vmatpush2.bf16.msra.mxu0 %v2758_v19 }
 0x11d   :  { %1789 = vmatprep.subr.bf16.mxu0 %v2763_v21  ;;  %1829 = vmatpush2.bf16.msra.mxu1 %v2806_v16 }
 0x11e   :  { %1830 = vmatprep.subr.bf16.mxu1 %v2811_v32  ;;  %v2821_v32 = vld [vmem:[#allocation10 + $0x78] sm:$0xff]  }
 0x120   :  { %1790 = vmatpush2.bf16.msra.mxu0 %v2761_v23 }
 0x121   :  { %1791 = vmatprep.subr.bf16.mxu0 %v2766_v25  ;;  %1831 = vmatpush2.bf16.msra.mxu1 %v2809_v34  ;;  %v2823_v34 = vld [vmem:[#allocation10 + $0x70] sm:$0xff]  }
 0x122   :  { %1832 = vmatprep.subr.bf16.mxu1 %v2814_v35  ;;  %v2824_v35 = vld [vmem:[#allocation10 + $0x30] sm:$0xff]  }
 0x124   :  { %1792 = vmatpush2.bf16.msra.mxu0 %v2764_v26 }
 0x125   :  { %1793 = vmatprep.subr.bf16.mxu0 %v2769_v28  ;;  %1833 = vmatpush2.bf16.msra.mxu1 %v2812_v36  ;;  %v2825_v36 = vld [vmem:[#allocation10 + $0x68] sm:$0xff]  }
 0x126   :  { %1834 = vmatprep.subr.bf16.mxu1 %v2817_v37  ;;  %v2826_v37 = vld [vmem:[#allocation10 + $0x28] sm:$0xff]  }
 0x128   :  { %1794 = vmatpush2.bf16.msra.mxu0 %v2767_v30 }
 0x129   :  { %1795 = vmatprep.subr.bf16.mxu0 %v2772_v31  ;;  %1835 = vmatpush2.bf16.msra.mxu1 %v2815_v38  ;;  %v2827_v38 = vld [vmem:[#allocation10 + $0x60] sm:$0xff]  }
 0x12a   :  { %1836 = vmatprep.subr.bf16.mxu1 %v2820_v39  ;;  %v2828_v39 = vld [vmem:[#allocation10 + $0x20] sm:$0xff]  }
 0x12c   :  { %1796 = vmatpush2.bf16.msra.mxu0 %v2770_v33  ;;  %v2822_v33 = vld [vmem:[#allocation10 + $0x38] sm:$0xff]  }
 0x12d   :  { %1837 = vmatpush2.bf16.msra.mxu1 %v2818_v40  ;;  %2413 = vmatprep.subr.bf16.mxu0 %v2821_v32  ;;  %v2829_v40 = vld [vmem:[#allocation10 + $0x58] sm:$0xff]  }
 0x12e   :  { %2444 = vmatprep.subr.bf16.mxu1 %v3008_v50 }
 0x14f   :  { %v1149_v42 = vpop.f32.mrf.mxu0 }
 0x150   :  { %v1190_v43 = vpop.f32.mrf.mxu1  ;;  %v1150_v56 = vadd.f32 %v1149_v42, %v280_v41  ;;  %v2830_v42 = vld [vmem:[#allocation10 + $0x18] sm:$0xff]   ;;  %v2839_v41 = vld [vmem:[#allocation11 + $0x28] sm:$0xff]  }
 0x151   :  { %v1151_v44 = vpop.f32.mrf.mxu0 }
 0x152   :  { %v1192_v45 = vpop.f32.mrf.mxu1  ;;  %v1152_v57 = vadd.f32 %v1151_v44, %v284_v55  ;;  %v1191_v58 = vadd.f32 %v1190_v43, %v1150_v56  ;;  %v2831_v43 = vld [vmem:[#allocation10 + $0x50] sm:$0xff]   ;;  %v2840_v55 = vld [vmem:[#allocation11 + $0x20] sm:$0xff]   ;;  %v2841_v56 = vld [vmem:[#allocation11 + $0x18] sm:$0xff]  }
 0x153   :  { %v1153_v46 = vpop.f32.mrf.mxu0  ;;  %v2832_v44 = vld [vmem:[#allocation10 + $0x10] sm:$0xff]  }
 0x154   :  { %v1194_v47 = vpop.f32.mrf.mxu1  ;;  %v1193_v60 = vadd.f32 %v1192_v45, %v1152_v57  ;;  %v2833_v45 = vld [vmem:[#allocation10 + $0x48] sm:$0xff]  }
 0x155   :  { %v1154_v48 = vpop.f32.mrf.mxu0  ;;  %v2834_v46 = vld [vmem:[#allocation10 + $0x8] sm:$0xff]   ;;  %v2835_v47 = vld [vmem:[#allocation10 + $0x40] sm:$0xff]  }
 0x156   :  { %v1195_v49 = vpop.f32.mrf.mxu1  ;;  %v2836_v48 = vld [vmem:[#allocation10] sm:$0xff]  }
 0x157   :  { %v2837_v49 = vld [vmem:[#allocation11 + $0x38] sm:$0xff]  }
 0x16f   :  { %v1231_v59 = vpop.f32.mrf.mxu0 }
 0x170   :  { %v1232_v51 = vadd.f32 %v1231_v59, %v1191_v58 }
 0x171   :  { %v1233_v61 = vpop.f32.mrf.mxu0 }
 0x172   :  { %v1234_v62 = vadd.f32 %v1233_v61, %v1193_v60  ;;  %v1361_v63 = vmax.f32 %v1232_v51, 0.0  ;;  %v1433_v51 = vld [vmem:[%s3131_s4] sm:$0x3] }
 0x173   :  { %v1235_v0 = vpop.f32.mrf.mxu0  ;;  %v1438_v61 = vrot.slane %v1433_v51, %v279_v53  ;;  %v2843_v53 = vld [vmem:[#allocation11 + $0x8] sm:$0xff]  }
 0x174   :  { %v1362_v1 = vmax.f32 %v1234_v62, 0.0  ;;  %v1365_v4 = vpack.c.bf16 %v1361_v63, %v1361_v63  ;;  %v1442_v62 = vrot.slane %v1433_v51, %v283_v7 }
 0x175   :  { %v1236_v2 = vpop.f32.mrf.mxu0 }
 0x176   :  { %v1366_v3 = vpack.c.bf16 %v1362_v1, %v1362_v1 }
 0x178   :  { %1797 = vmatprep.mubr.bf16.mxu0 %v1366_v3 }
 0x179   :  { %1798 = vmatmul.mubr.bf16.vlgmr.msra.gmra.mxu0 %v1365_v4 }
 0x17a   :  { %2414 = vmatpush3.bf16.msra.mxu0 %v2822_v33 }
 0x17b   :  { %2415 = vmatprep.subr.bf16.mxu0 %v2823_v34 }
 0x17e   :  { %2416 = vmatpush3.bf16.msra.mxu0 %v2824_v35 }
 0x17f   :  { %2417 = vmatprep.subr.bf16.mxu0 %v2825_v36 }
 0x182   :  { %2418 = vmatpush3.bf16.msra.mxu0 %v2826_v37 }
 0x183   :  { %2419 = vmatprep.subr.bf16.mxu0 %v2827_v38 }
 0x186   :  { %2420 = vmatpush3.bf16.msra.mxu0 %v2828_v39 }
 0x187   :  { %2421 = vmatprep.subr.bf16.mxu0 %v2829_v40 }
 0x18a   :  { %2422 = vmatpush3.bf16.msra.mxu0 %v2830_v42 }
 0x18b   :  { %2423 = vmatprep.subr.bf16.mxu0 %v2831_v43 }
 0x18e   :  { %2424 = vmatpush3.bf16.msra.mxu0 %v2832_v44 }
 0x18f   :  { %2425 = vmatprep.subr.bf16.mxu0 %v2833_v45 }
 0x190   :  { %v1272_v5 = vpop.f32.mrf.mxu1 }
 0x191   :  { %v1273_v15 = vadd.f32 %v1272_v5, %v288_v13  ;;  %v2842_v13 = vld [vmem:[#allocation11 + $0x10] sm:$0xff]  }
 0x192   :  { %v1274_v8 = vpop.f32.mrf.mxu1  ;;  %2426 = vmatpush3.bf16.msra.mxu0 %v2834_v46 }
 0x193   :  { %v1275_v19 = vadd.f32 %v1274_v8, %v292_v14  ;;  %2427 = vmatprep.subr.bf16.mxu0 %v2835_v47  ;;  %v2387_v14 = vld [vmem:[%s3133_s6] ss:$0 sm:$0xff]  ;;  %s2965_s6 = scalar_lea.vmem %s2147_s24, 128 }
 0x194   :  { %v1276_v9 = vpop.f32.mrf.mxu1  ;;  %p2966_p2 = scmp.ne.s32.totalorder %s2147_s24, %s2965_s6  ;;  %p2971_p4 = scmp.lt.s32.totalorder %s2965_s6, %s2965_s6 }
 0x196   :  { %v1277_v10 = vpop.f32.mrf.mxu1  ;;  %2428 = vmatpush3.bf16.msra.mxu0 %v2836_v48  ;;  %p2972_p5 = por %p2971_p4, %p2970_p3 }
 0x198   :  { %p2973_p6 = pnand %p2972_p5, %p2966_p2 }
 0x1af   :  { %v1313_v17 = vpop.f32.mrf.mxu0 }
 0x1b0   :  { %v1354_v18 = vpop.f32.mrf.mxu1  ;;  %v1314_v20 = vadd.f32 %v1313_v17, %v1273_v15 }
 0x1b1   :  { %v1315_v21 = vpop.f32.mrf.mxu0 }
 0x1b2   :  { %v1356_v22 = vpop.f32.mrf.mxu1  ;;  %v1355_v23 = vadd.f32 %v1354_v18, %v1314_v20  ;;  %v1316_v24 = vadd.f32 %v1315_v21, %v1275_v19 }
 0x1b3   :  { %v1317_v25 = vpop.f32.mrf.mxu0 }
 0x1b4   :  { %v1358_v6 = vpop.f32.mrf.mxu1  ;;  %v1357_v26 = vadd.f32 %v1356_v22, %v1316_v24  ;;  %v1363_v27 = vmax.f32 %v1355_v23, 0.0  ;;  %v2404_v23 = vld [vmem:[%s3135_s8] ss:$0 sm:$0xff] }
 0x1b5   :  { %v1318_v28 = vpop.f32.mrf.mxu0 }
 0x1b6   :  { %v1359_v29 = vpop.f32.mrf.mxu1  ;;  %v1364_v30 = vmax.f32 %v1357_v26, 0.0  ;;  %v1367_v31 = vpack.c.bf16 %v1363_v27, %v1363_v27 }
 0x1b8   :  { %v1368_v16 = vpack.c.bf16 %v1364_v30, %v1364_v30 }
 0x1ba   :  { %1838 = vmatprep.mubr.bf16.mxu1 %v1368_v16 }
 0x1bb   :  { %1839 = vmatmul.mubr.bf16.vlgmr.msra.gmra.mxu1 %v1367_v31 }
 0x1bc   :  { %2445 = vmatpush3.bf16.msra.mxu1 %v2837_v49  ;;  %2460 = vmatprep.mubr.msk.bf16.mxu1 %vm3009_vm0, %v3008_v50 }
 0x1bd   :  { %2446 = vmatprep.subr.bf16.mxu1 %v3008_v50 }
 0x1c0   :  { %2447 = vmatpush3.bf16.msra.mxu1 %v2838_v54 }
 0x1c1   :  { %2448 = vmatprep.subr.bf16.mxu1 %v3008_v50 }
 0x1c4   :  { %2449 = vmatpush3.bf16.msra.mxu1 %v2839_v41 }
 0x1c5   :  { %2450 = vmatprep.subr.bf16.mxu1 %v3008_v50 }
 0x1c8   :  { %2451 = vmatpush3.bf16.msra.mxu1 %v2840_v55 }
 0x1c9   :  { %2452 = vmatprep.subr.bf16.mxu1 %v3008_v50 }
 0x1cc   :  { %2453 = vmatpush3.bf16.msra.mxu1 %v2841_v56 }
 0x1cd   :  { %2454 = vmatprep.subr.bf16.mxu1 %v3008_v50 }
 0x1d0   :  { %2455 = vmatpush3.bf16.msra.mxu1 %v2842_v13 }
 0x1d1   :  { %2456 = vmatprep.subr.bf16.mxu1 %v3008_v50 }
 0x1d4   :  { %2457 = vmatpush3.bf16.msra.mxu1 %v2843_v53 }
 0x1d5   :  { %2458 = vmatprep.subr.bf16.mxu1 %v3008_v50 }
 0x1d8   :  { %2459 = vmatpush3.bf16.msra.mxu1 %v2844_v52 }
 0x239   :  { %v1799_v57 = vpop.f32.mrf.mxu0 }
 0x23a   :  { %v1800_v63 = vadd.f32 %v1799_v57, %v1438_v61 }
 0x23b   :  { %v1801_v58 = vpop.f32.mrf.mxu0 }
 0x23c   :  { %v1802_v1 = vadd.f32 %v1801_v58, %v1442_v62 }
 0x23d   :  { %v1803_v59 = vpop.f32.mrf.mxu0 }
 0x23f   :  { %v1804_v60 = vpop.f32.mrf.mxu0 }
 0x27b   :  { %v1840_v0 = vpop.f32.mrf.mxu1 }
 0x27c   :  { %v1841_v2 = vadd.f32 %v1840_v0, %v1800_v63 }
 0x27d   :  { %v1842_v3 = vpop.f32.mrf.mxu1 }
 0x27e   :  { %v1843_v4 = vadd.f32 %v1842_v3, %v1802_v1  ;;  %v1847_v5 = vmax.f32 %v1841_v2, 0.0 }
 0x27f   :  { %v1844_v8 = vpop.f32.mrf.mxu1 }
 0x280   :  { %v1848_v9 = vmax.f32 %v1843_v4, 0.0  ;;  %v1849_v12 = vpack.c.bf16 %v1847_v5, %v1847_v5 }
 0x281   :  { %v1845_v10 = vpop.f32.mrf.mxu1 }
 0x282   :  { %v1850_v11 = vpack.c.bf16 %v1848_v9, %v1848_v9 }
 0x284   :  { %2018 = vmatprep.mubr.bf16.mxu0 %v1850_v11 }
 0x285   :  { %2019 = vmatmul.mubr.bf16.vlgmr.msra.gmra.mxu0 %v1849_v12 }
 0x345   :  { %v2429_v7 = vpop.f32.mrf.mxu0 }
 0x347   :  { %v2430_v15 = vpop.f32.mrf.mxu0 }
 0x348   :  { %v2431_v17 = vadd.f32 %v2430_v15, %v2429_v7 }
 0x349   :  { %v2432_v18 = vpop.f32.mrf.mxu0 }
 0x34a   :  { %v2021_v19 = vadd.f32 %v2431_v17, %v2387_v14 }
 0x34b   :  { %v2433_v20 = vpop.f32.mrf.mxu0 }
 0x34c   :  { %v2026_v21 = vmax.f32 %v2021_v19, 0.0 }
 0x34e   :  { %v2027_v22 = vpack.c.bf16 %v2026_v21, %v2026_v21 }
 0x350   :  { %2461 = vmatmul.mubr.bf16.vlgmr.msra.gmra.mxu1 %v2027_v22 }
 0x410   :  { %v2133_v24 = vpop.f32.mrf.mxu1 }
 0x411   :  { %v2134_v25 = vadd.f32 %v2404_v23, %v2133_v24 }
 0x412   :  { %v2462_v6 = vpop.f32.mrf.mxu1 }
 0x413   :  { %2139 = vst [vmem:[#allocation13] sm:$0xff] %v2134_v25 }
 0x414   :  { %v2136_v26 = vpop.f32.mrf.mxu1 }
 0x415   :  { %2976 = shalt.err (!%p2973_p6)
}
 0x416   :  { %2149 = dma.vmem_to_hbm [thread:$0]  %s2147_s24, 128, %s3136_s9, [#allocation4]   ;;  %v2463_v27 = vpop.f32.mrf.mxu1 }
 0x417   :  { %2993 = dma.done.wait [#allocation4], 128  }
 0x418   :  { %2994 = vsyncadd [#allocation4], 4294967168 }
 0x419   :  { %2153 = vsyncpa [#allocation3], 1 }
 0x41a   :  { %2154 = vsyncpa [#allocation6], 1 }
 0x41b   :  { %2155 = vsyncpa [#allocation9], 1 }
 0x41c   :  { %2156 = vsyncpa [#allocation12], 1 }
 0x41d   :  { %2157 = vsyncpa [#allocation4], 1 }

</bundles_post_ra>
